<compile_context>
chip_gen: v5e
topology: v5e:2x2
jax: 0.10.0
libtpu: 0.0.40
codegen_flags: <defaults>
</compile_context>

<pallas_src>
import functools
import math

import jax
import jax.numpy as jnp
from jax import lax
from jax.experimental import pallas as pl
from jax.experimental.pallas import tpu as pltpu


def _round_up(x, m):
    return (x + m - 1) // m * m


_ROW_CHUNK = 256  # main sub-chunk of output rows processed per matmul+epilogue


def _conv_bn_silu_kernel(x_ref, w_ref, scale_ref, shift_ref, o_ref, *, k_taps):
    # x_ref:     (1, tl + K - 1, C1p) bf16  input rows for this tile + halo
    # w_ref:     (K, C1p, C2p)        bf16  per-tap conv weights (constant block)
    # scale_ref: (1, C2p) f32, shift_ref: (1, C2p) f32  BN affine (inference)
    # o_ref:     (1, tl, C2p)         bf16  output tile
    scale = scale_ref[...]
    shift = shift_ref[...]
    tl = o_ref.shape[1]
    c2p = o_ref.shape[2]

    def process(base, rc):
        acc = jnp.zeros((rc, c2p), jnp.float32)
        for t in range(k_taps):                       # static, small (K taps)
            xs = x_ref[0, pl.ds(base + t, rc), :]     # (rc, C1p) bf16, shifted rows
            acc = acc + jnp.dot(xs, w_ref[t],
                                preferred_element_type=jnp.float32)
        y = acc * scale + shift                       # BN affine in f32
        sig = pl.reciprocal(1.0 + jnp.exp(-y), approx=True)   # sigmoid via EUP
        o_ref[0, pl.ds(base, rc), :] = (y * sig).astype(o_ref.dtype)

    n_full = tl // _ROW_CHUNK
    rem = tl - n_full * _ROW_CHUNK                    # multiple of 8 by construction
    if n_full > 0:
        def body(c, carry):
            process(pl.multiple_of(c * _ROW_CHUNK, 8), _ROW_CHUNK)
            return carry
        lax.fori_loop(0, n_full, body, 0, unroll=True)
    if rem > 0:
        process(n_full * _ROW_CHUNK, rem)             # static trailing chunk


def conv_bn_silu(x_ncl, weight_oik, gamma, beta, run_mean, run_var,
                 *, stride=1, pad=None, groups=1, dilation=1, eps=1e-5,
                 compute_dtype=jnp.bfloat16, target_tl=1024):
    """x_ncl: (N, C1, L) like PyTorch Conv1d input. Returns (N, C2, L_out) f32."""
    if stride != 1 or groups != 1 or dilation != 1:
        raise NotImplementedError("only stride=1, groups=1, dilation=1 supported")
    N, C1, L = x_ncl.shape
    C2, C1w, K = weight_oik.shape
    assert C1 == C1w
    if pad is None:
        pad = K // 2  # autopad: 'same' length only for odd K (matches PyTorch autopad)
    L_out = L + 2 * pad - (K - 1)

    # Channel padding to lane width (128).  NOTE: bump to 256 only when the
    # kernel is compute-bound (large C1/C2) to fill v6e/v7x's 256-deep MXU.
    C1p = _round_up(C1, 128)
    C2p = _round_up(C2, 128)

    # L tiling: balanced tiles near target_tl, rounded up to 8 rows (sublane),
    # so padding waste stays tiny for any L_out.
    n_tiles = max(1, math.ceil(L_out / target_tl))
    tl = _round_up(math.ceil(L_out / n_tiles), 8)
    L_p = n_tiles * tl
    TLh = tl + K - 1                                  # tile rows + conv halo

    # ---- wrapper-side layout (cast to bf16 FIRST, then transpose/pad/stack) ----
    x_nlc = jnp.transpose(x_ncl.astype(compute_dtype), (0, 2, 1))    # (N, L, C1) bf16
    pad_r = (L_p + K - 1) - (pad + L)                                # >= pad >= 0
    xp = jnp.pad(x_nlc, ((0, 0), (pad, pad_r), (0, C1p - C1)))       # (N, Lp+K-1, C1p)

    # Halo-stacked tiles: (K-1)/tl read amplification instead of Kx im2col.
    xt = jnp.stack([xp[:, j * tl: j * tl + TLh, :] for j in range(n_tiles)], axis=1)
    G = N * n_tiles
    xt = xt.reshape(G, TLh, C1p)                                     # (G, TLh, C1p)

    # Per-tap weights, unscaled bf16 (BN scale applied in f32 epilogue).
    w_t = jnp.transpose(weight_oik, (2, 1, 0))                       # (K, C1, C2)
    w_t = jnp.pad(w_t, ((0, 0), (0, C1p - C1), (0, C2p - C2))).astype(compute_dtype)

    scale = (gamma / jnp.sqrt(run_var + eps)).astype(jnp.float32)    # (C2,)
    shift = (beta - run_mean * scale).astype(jnp.float32)            # (C2,)
    scale_p = jnp.pad(scale, (0, C2p - C2)).reshape(1, C2p)
    shift_p = jnp.pad(shift, (0, C2p - C2)).reshape(1, C2p)

    kernel = functools.partial(_conv_bn_silu_kernel, k_taps=K)

    out = pl.pallas_call(
        kernel,
        out_shape=jax.ShapeDtypeStruct((G, tl, C2p), compute_dtype),  # bf16 stores
        grid_spec=pltpu.PrefetchScalarGridSpec(
            num_scalar_prefetch=0,
            grid=(G,),                                                # N*L_tiles, flat
            in_specs=[
                pl.BlockSpec((1, TLh, C1p), lambda g: (g, 0, 0)),     # x tile + halo
                pl.BlockSpec((K, C1p, C2p), lambda g: (0, 0, 0)),     # weights (const)
                pl.BlockSpec((1, C2p), lambda g: (0, 0)),             # BN scale (const)
                pl.BlockSpec((1, C2p), lambda g: (0, 0)),             # BN shift (const)
            ],
            out_specs=pl.BlockSpec((1, tl, C2p), lambda g: (g, 0, 0)),
        ),
        compiler_params=pltpu.CompilerParams(
            dimension_semantics=("parallel",),
            vmem_limit_bytes=32 * 1024 * 1024,   # safe on v5e/v6e/v7x at these tiles
        ),
    )(xt, w_t, scale_p, shift_p)

    # TODO(synk): for chained conv layers, keep NLC bf16 and skip this transpose.
    out = out.reshape(N, L_p, C2p)[:, :L_out, :C2]                   # drop padding
    return jnp.transpose(out, (0, 2, 1)).astype(jnp.float32)         # (N, C2, L_out)


def _reference(x_ncl, weight_oik, gamma, beta, run_mean, run_var, *, pad, eps=1e-5):
    y = lax.conv_general_dilated(
        x_ncl.astype(jnp.float32), weight_oik.astype(jnp.float32),
        window_strides=(1,), padding=[(pad, pad)],
        dimension_numbers=("NCH", "OIH", "NCH"))
    scale = gamma / jnp.sqrt(run_var + eps)
    shift = beta - run_mean * scale
    y = y * scale[None, :, None] + shift[None, :, None]
    return y * jax.nn.sigmoid(y)


if __name__ == "__main__":
    # Module config: Conv(c1=4, c2=8, k=3) -> autopad = 1, stride=1, groups=1, dilation=1
    N, C1, C2, L, K = 2, 4, 8, 16, 3
    pad = K // 2

    key = jax.random.PRNGKey(0)
    kx, kw, kg, kb, km, kv = jax.random.split(key, 6)

    x = jax.random.normal(kx, (N, C1, L), dtype=jnp.float32)
    # Conv1d weight (out_channels, in_channels/groups, k), Kaiming-uniform-like init
    bound = 1.0 / math.sqrt(C1 * K)
    weight = jax.random.uniform(kw, (C2, C1, K), minval=-bound, maxval=bound,
                                dtype=jnp.float32)
    # BatchNorm1d parameters / running stats (inference-mode semantics)
    gamma = 1.0 + 0.1 * jax.random.normal(kg, (C2,), dtype=jnp.float32)
    beta = 0.1 * jax.random.normal(kb, (C2,), dtype=jnp.float32)
    run_mean = 0.1 * jax.random.normal(km, (C2,), dtype=jnp.float32)
    run_var = jnp.abs(1.0 + 0.1 * jax.random.normal(kv, (C2,), dtype=jnp.float32))

    out = conv_bn_silu(x, weight, gamma, beta, run_mean, run_var, pad=pad)
    out = jax.block_until_ready(out)

    ref = _reference(x, weight, gamma, beta, run_mean, run_var, pad=pad)
    assert out.shape == (N, C2, L)
    # bf16 MXU inputs and bf16 output stream -> relaxed tolerance vs f32 reference
    assert jnp.allclose(out, ref, atol=3e-2, rtol=3e-2)

    print("KERNEL_OK")
</pallas_src>

<mosaic_0001>
module attributes {stable_mosaic.version = 11 : i64} {
  func.func @_conv_bn_silu_kernel(%arg0: i32, %arg1: memref<1x18x128xbf16, #tpu.memory_space<vmem>>, %arg2: memref<3x128x128xbf16, #tpu.memory_space<vmem>>, %arg3: memref<1x128xf32, #tpu.memory_space<vmem>>, %arg4: memref<1x128xf32, #tpu.memory_space<vmem>>, %arg5: memref<1x16x128xbf16, #tpu.memory_space<vmem>>) attributes {dimension_semantics = [#tpu.dimension_semantics<parallel>], iteration_bounds = array<i64: 2>, scalar_prefetch = 0 : i64, scratch_operands = 0 : i64, tpu.core_type = #tpu.core_type<tc>, window_params = [{transform_indices = @transform_0, window_bounds = array<i64: 1, 18, 128>}, {pipeline_mode = #tpu.pipeline_mode<synchronous>, transform_indices = @transform_1, window_bounds = array<i64: 3, 128, 128>}, {pipeline_mode = #tpu.pipeline_mode<synchronous>, transform_indices = @transform_2, window_bounds = array<i64: 1, 128>}, {pipeline_mode = #tpu.pipeline_mode<synchronous>, transform_indices = @transform_3, window_bounds = array<i64: 1, 128>}, {transform_indices = @transform_4, window_bounds = array<i64: 1, 16, 128>}]} {
    %c0 = arith.constant 0 : index
    %c0_0 = arith.constant 0 : index
    %0 = vector.load %arg3[%c0, %c0_0] : memref<1x128xf32, #tpu.memory_space<vmem>>, vector<1x128xf32>
    %c0_1 = arith.constant 0 : index
    %c0_2 = arith.constant 0 : index
    %1 = vector.load %arg4[%c0_1, %c0_2] : memref<1x128xf32, #tpu.memory_space<vmem>>, vector<1x128xf32>
    %cst = arith.constant 0.000000e+00 : f32
    %2 = vector.broadcast %cst : f32 to vector<16x128xf32>
    %c0_3 = arith.constant 0 : index
    %c0_4 = arith.constant 0 : index
    %c0_5 = arith.constant 0 : index
    %3 = vector.load %arg1[%c0_3, %c0_4, %c0_5] : memref<1x18x128xbf16, #tpu.memory_space<vmem>>, vector<1x16x128xbf16>
    %4 = vector.shape_cast %3 : vector<1x16x128xbf16> to vector<16x128xbf16>
    %c0_6 = arith.constant 0 : index
    %c0_7 = arith.constant 0 : index
    %c0_8 = arith.constant 0 : index
    %5 = vector.load %arg2[%c0_6, %c0_7, %c0_8] : memref<3x128x128xbf16, #tpu.memory_space<vmem>>, vector<1x128x128xbf16>
    %6 = vector.shape_cast %5 : vector<1x128x128xbf16> to vector<128x128xbf16>
    %cst_9 = arith.constant dense<0.000000e+00> : vector<16x128xf32>
    %7 = tpu.matmul %4, %6, %cst_9 {dimension_numbers = #tpu.dot_dimension_numbers<[1], [0], [0], [1], [0, 0, 1, 1], [], []>} : vector<16x128xbf16>, vector<128x128xbf16>, vector<16x128xf32> -> vector<16x128xf32>
    %8 = arith.addf %2, %7 : vector<16x128xf32>
    %c0_10 = arith.constant 0 : index
    %c1 = arith.constant 1 : index
    %c0_11 = arith.constant 0 : index
    %9 = vector.load %arg1[%c0_10, %c1, %c0_11] : memref<1x18x128xbf16, #tpu.memory_space<vmem>>, vector<1x16x128xbf16>
    %10 = vector.shape_cast %9 : vector<1x16x128xbf16> to vector<16x128xbf16>
    %c1_12 = arith.constant 1 : index
    %c0_13 = arith.constant 0 : index
    %c0_14 = arith.constant 0 : index
    %11 = vector.load %arg2[%c1_12, %c0_13, %c0_14] : memref<3x128x128xbf16, #tpu.memory_space<vmem>>, vector<1x128x128xbf16>
    %12 = vector.shape_cast %11 : vector<1x128x128xbf16> to vector<128x128xbf16>
    %cst_15 = arith.constant dense<0.000000e+00> : vector<16x128xf32>
    %13 = tpu.matmul %10, %12, %cst_15 {dimension_numbers = #tpu.dot_dimension_numbers<[1], [0], [0], [1], [0, 0, 1, 1], [], []>} : vector<16x128xbf16>, vector<128x128xbf16>, vector<16x128xf32> -> vector<16x128xf32>
    %14 = arith.addf %8, %13 : vector<16x128xf32>
    %c0_16 = arith.constant 0 : index
    %c2 = arith.constant 2 : index
    %c0_17 = arith.constant 0 : index
    %15 = vector.load %arg1[%c0_16, %c2, %c0_17] : memref<1x18x128xbf16, #tpu.memory_space<vmem>>, vector<1x16x128xbf16>
    %16 = vector.shape_cast %15 : vector<1x16x128xbf16> to vector<16x128xbf16>
    %c2_18 = arith.constant 2 : index
    %c0_19 = arith.constant 0 : index
    %c0_20 = arith.constant 0 : index
    %17 = vector.load %arg2[%c2_18, %c0_19, %c0_20] : memref<3x128x128xbf16, #tpu.memory_space<vmem>>, vector<1x128x128xbf16>
    %18 = vector.shape_cast %17 : vector<1x128x128xbf16> to vector<128x128xbf16>
    %cst_21 = arith.constant dense<0.000000e+00> : vector<16x128xf32>
    %19 = tpu.matmul %16, %18, %cst_21 {dimension_numbers = #tpu.dot_dimension_numbers<[1], [0], [0], [1], [0, 0, 1, 1], [], []>} : vector<16x128xbf16>, vector<128x128xbf16>, vector<16x128xf32> -> vector<16x128xf32>
    %20 = arith.addf %14, %19 : vector<16x128xf32>
    %21 = vector.broadcast %0 : vector<1x128xf32> to vector<16x128xf32>
    %22 = arith.mulf %20, %21 : vector<16x128xf32>
    %23 = vector.broadcast %1 : vector<1x128xf32> to vector<16x128xf32>
    %24 = arith.addf %22, %23 : vector<16x128xf32>
    %cst_22 = arith.constant 0.000000e+00 : f32
    %25 = vector.broadcast %cst_22 : f32 to vector<16x128xf32>
    %26 = arith.subf %25, %24 : vector<16x128xf32>
    %27 = math.exp %26 : vector<16x128xf32>
    %cst_23 = arith.constant 1.000000e+00 : f32
    %28 = vector.broadcast %cst_23 : f32 to vector<16x128xf32>
    %29 = arith.addf %28, %27 : vector<16x128xf32>
    %30 = tpu.reciprocal %29 {approx = true} : vector<16x128xf32> -> vector<16x128xf32>
    %31 = arith.mulf %24, %30 : vector<16x128xf32>
    %32 = arith.truncf %31 : vector<16x128xf32> to vector<16x128xbf16>
    %c0_24 = arith.constant 0 : index
    %c0_25 = arith.constant 0 : index
    %c0_26 = arith.constant 0 : index
    %33 = vector.load %arg5[%c0_24, %c0_25, %c0_26] : memref<1x16x128xbf16, #tpu.memory_space<vmem>>, vector<1x16x128xbf16>
    %34 = vector.shape_cast %33 : vector<1x16x128xbf16> to vector<16x128xbf16>
    %35 = vector.shape_cast %32 : vector<16x128xbf16> to vector<1x16x128xbf16>
    tpu.vector_store %arg5[%c0_24, %c0_25, %c0_26], %35 {strides = array<i32>} : memref<1x16x128xbf16, #tpu.memory_space<vmem>>, vector<1x16x128xbf16>,
    return
  }
  func.func @transform_0(%arg0: i32) -> (i32, i32, i32) {
    %c0_i32 = arith.constant 0 : i32
    %c0_i32_0 = arith.constant 0 : i32
    %c0_i32_1 = arith.constant 0 : i32
    return %arg0, %c0_i32, %c0_i32_0 : i32, i32, i32
  }
  func.func @transform_1(%arg0: i32) -> (i32, i32, i32) {
    %c0_i32 = arith.constant 0 : i32
    %c0_i32_0 = arith.constant 0 : i32
    %c0_i32_1 = arith.constant 0 : i32
    %c0_i32_2 = arith.constant 0 : i32
    return %c0_i32, %c0_i32_0, %c0_i32_1 : i32, i32, i32
  }
  func.func @transform_2(%arg0: i32) -> (i32, i32) {
    %c0_i32 = arith.constant 0 : i32
    %c0_i32_0 = arith.constant 0 : i32
    %c0_i32_1 = arith.constant 0 : i32
    return %c0_i32, %c0_i32_0 : i32, i32
  }
  func.func @transform_3(%arg0: i32) -> (i32, i32) {
    %c0_i32 = arith.constant 0 : i32
    %c0_i32_0 = arith.constant 0 : i32
    %c0_i32_1 = arith.constant 0 : i32
    return %c0_i32, %c0_i32_0 : i32, i32
  }
  func.func @transform_4(%arg0: i32) -> (i32, i32, i32) {
    %c0_i32 = arith.constant 0 : i32
    %c0_i32_0 = arith.constant 0 : i32
    %c0_i32_1 = arith.constant 0 : i32
    return %arg0, %c0_i32, %c0_i32_0 : i32, i32, i32
  }
}

</mosaic_0001>

<bundles_post_ra>
// kernel: tpu_custom_call.1
= control target key start
LH: loop header
LB: loop body
LE: loop exit
PB: predicated region body
PF: predicated region fallthrough
CT: control target
= control target key end

     0   :  { %9 = vsyncpa [#allocation3], 0  ;;  %s1047_s0 = inlined_call_operand.vmem [shape: bf16[2,18,128], index: 0, kind: input, shape index: {}]   ;;  %s1048_s1 = inlined_call_operand.hbm [shape: bf16[3,128,128], index: 1, kind: input, shape index: {}]   ;;  %s1049_s2 = inlined_call_operand.vmem [shape: f32[1,128], index: 2, kind: input, shape index: {}]   ;;  %s1050_s3 = inlined_call_operand.vmem [shape: f32[1,128], index: 3, kind: input, shape index: {}]   ;;  %s1051_s4 = inlined_call_operand.hbm [shape: bf16[2,16,128], index: 4, kind: output, shape index: {}]  }
   0x1   :  { %10 = vsyncpa [#allocation4], 0 }
   0x2   :  { %12 = vsyncpa [#allocation4 + $0x1], 0  ;;  %s943_s15 = smov 0   ;;  %s945_s16 = smov 0  }
   0x3   :  { %s947_s17 = smov 0   ;;  %s949_s18 = smov 0  }
   0x4 LB: > { %s964_s19 = sadd.s32 4294967295, %s911_s18   ;;  %s604_s20 = sadd.s32 4294967294, %s911_s18   ;;  %s911_s18 = sphi %s949_s18, %s1057_s18   ;;  %s907_s17 = sphi %s947_s17, %s1056_s17   ;;  %s903_s16 = sphi %s945_s16, %s1055_s16   ;;  %s899_s15 = sphi %s943_s15, %s1054_s15  }
   0x5   : > { %s968_s21 = sadd.s32 1, %s911_s18   ;;  %s114_s22 = sadd.s32 1, %s907_s17 }
   0x6   : > { %s111_s23 = ssub.s32 %s911_s18, %s968_s21  ;;  %p124_p0 = scmp.ne.s32.totalorder %s907_s17, %s903_s16 }
   0x7   : > { %p112_p1 = scmp.eq.s32.totalorder %s111_s23, 0  ;;  %p125_p2 = scmp.eq.s32.totalorder %s964_s19, 1 }
   0x8   : > { %p130_p3 = scmp.ne.s32.totalorder %s903_s16, %s899_s15  ;;  %p131_p4 = scmp.eq.s32.totalorder %s604_s20, 1 }
   0x9   : > { %s979_s24 = scalar_select %p112_p1, %s907_s17, %s114_s22  }
   0xa   : > { %p981_p5 = por %p125_p2, %p124_p0  ;;  %p985_p6 = por %p131_p4, %p130_p3 }
   0xb   : > { %p605_p7 = scmp.ge.s32.totalorder %s911_s18, 1  ;;  %p138_p8 = scmp.lt.s32.totalorder %s911_s18, 3 }
   0xc   : > { %p765_p9 = scmp.eq.s32.totalorder %s964_s19, 0  ;;  %s149_s29 = sshll.u32 %s1048_s1, 4  ;;  %s150_s29 = int_to_ptr.hbm [resolvable:$true] %s149_s29 }
   0xd   : > { %p139_p10 = pnand %p605_p7, %p138_p8  ;;  %s913_s30 = smov [#allocation2]  }
   0xe   : > { %s151_s5 = sshll.u32 %s913_s30, 4  ;;  %s914_s6 = smov 64   ;;  %s152_s5 = int_to_ptr.vmem [resolvable:$true] %s151_s5 }
   0xf   : > { %p757_p11 = pneg %p139_p10  ;;  %s915_s7 = smov 4  }
  0x10   : > { %181 = sbr.rel (%p139_p10) target bundleno = 230 (0xe6), region = 36 }
  0x11   : > { %p758_p12 = pnand %p765_p9, %p757_p11 }
  0x13   : > { %760 = dma.hbm_to_vmem [thread:$0]  (!%p758_p12), %s150_s29, 3072, %s152_s5, [#allocation3], %s914_s6, %s914_s6, %s915_s7  }
  0x15   : > { %890 = dma.done.wait (%p765_p9), [#allocation3], 3072  }
  0x16   : > { %892 = vsyncadd (%p765_p9), [#allocation3], 4294964224  ;;  %p208_p13 = scmp.lt.s32.totalorder %s964_s19, 1  ;;  %v728_v0 = vld [vmem:[#allocation2 + $0x78] sm:$0xff]  ;;  %v727_v3 = vld [vmem:[#allocation2 + $0x70] sm:$0xff]  ;;  %vm419_vm1 = vcmask 1046528  }
  0x17   : > { %v720_v1 = vld [vmem:[#allocation2 + $0x38] sm:$0xff]  ;;  %321 = vmatpush.bf16.msra.mxu0 %v728_v0  ;;  %v719_v4 = vld [vmem:[#allocation2 + $0x30] sm:$0xff]  ;;  %v726_v6 = vld [vmem:[#allocation2 + $0x68] sm:$0xff]  ;;  %vm259_vm0 = vsmask.f32 7424  ;;  %s205_s23 = sand.u32 1, %s903_s16  }
  0x18   : > { %v736_v2 = vld [vmem:[#allocation2 + $0xb8] sm:$0xff]  ;;  %s209_s8 = scalar_select %p208_p13, %s964_s19, 1  ;;  %384 = vmatpush.bf16.msra.mxu1 %v720_v1  ;;  %v735_v5 = vld [vmem:[#allocation2 + $0xb0] sm:$0xff]  ;;  %v718_v7 = vld [vmem:[#allocation2 + $0x28] sm:$0xff] }
  0x19   : > { %472 = vmatpush.bf16.msra.mxu2 %v736_v2  ;;  %v734_v8 = vld [vmem:[#allocation2 + $0xa8] sm:$0xff]  ;;  %v725_v9 = vld [vmem:[#allocation2 + $0x60] sm:$0xff]  ;;  %v724_v13 = vld [vmem:[#allocation2 + $0x58] sm:$0xff]  ;;  %s610_s27 = sshll.u32 %s205_s23, 3  ;;  %s737_s28 = sshll.u32 %s964_s19, 3 }
  0x1a   : > { %s750_s9 = smul.u32 12, %s209_s8  ;;  %v717_v10 = vld [vmem:[#allocation2 + $0x20] sm:$0xff]  ;;  %v716_v14 = vld [vmem:[#allocation2 + $0x18] sm:$0xff]  ;;  %v723_v18 = vld [vmem:[#allocation2 + $0x50] sm:$0xff]  ;;  %s526_s5 = scalar_lea.hbm %s1051_s4, %s737_s28 }
  0x1b   : > { %322 = vmatpush.bf16.msra.mxu0 %v727_v3  ;;  %v733_v11 = vld [vmem:[#allocation2 + $0xa0] sm:$0xff]  ;;  %v732_v16 = vld [vmem:[#allocation2 + $0x98] sm:$0xff]  ;;  %v715_v19 = vld [vmem:[#allocation2 + $0x10] sm:$0xff]  ;;  %s207_s6 = scalar_lea.vmem [#allocation5], %s610_s27  ;;  %s529_s8 = sshll.u32 %s526_s5, 4  ;;  %s530_s8 = int_to_ptr.hbm [resolvable:$true] %s529_s8 }
  0x1c   : > { %385 = vmatpush.bf16.msra.mxu1 %v719_v4  ;;  %s212_s12 = scalar_lea.vmem %s1047_s0, %s750_s9  ;;  %v731_v22 = vld [vmem:[#allocation2 + $0x90] sm:$0xff]  ;;  %v722_v25 = vld [vmem:[#allocation2 + $0x48] sm:$0xff]  ;;  %v721_v32 = vld [vmem:[#allocation2 + $0x40] sm:$0xff]  ;;  %s1017_s7 = sshll.u32 %s207_s6, 4  ;;  %s528_s7 = int_to_ptr.vmem [resolvable:$true] %s1017_s7 }
  0x1d   : > { %473 = vmatpush.bf16.msra.mxu2 %v735_v5  ;;  %v233_v12 = vld [vmem:[%s212_s12 + $0x8] sm:$0x1]  ;;  %v739_v17 = vld [vmem:[%s212_s12] sm:$0xff]   ;;  %s515_s19 = scalar_lea.sflag [#allocation4], %s205_s23  ;;  %s859_s9 = sshra.s32 %s530_s8, 4  ;;  %s860_s9 = int_to_ptr.hbm [resolvable:$true] %s859_s9 }
  0x1e   : > { %v256_v15 = vunpack.c.l.b16 %v233_v12  ;;  %v263_v21 = vshll.u32 %v739_v17, 16  ;;  %v747_v23 = vld [vmem:[%s212_s12] sm:$0xf0]  ;;  %v748_v24 = vld [vmem:[%s212_s12] sm:$0xe]  ;;  %v714_v26 = vld [vmem:[#allocation2 + $0x8] sm:$0xff]  ;;  %p866_p3 = scmp.lt.s32.totalorder %s860_s9, %s1051_s4 }
  0x1f   : > { %323 = vmatpush.bf16.msra.mxu0 %v726_v6  ;;  %v261_v27 = vshrl.u32 %v739_v17, 16  ;;  %v730_v30 = vld [vmem:[#allocation2 + $0x88] sm:$0xff]  ;;  %v749_v31 = vor.u32 %v748_v24, %v747_v23  ;;  %v713_v33 = vld [vmem:[#allocation2] sm:$0xff]  ;;  %s861_s10 = scalar_lea.hbm %s860_s9, 8  ;;  %s865_s13 = scalar_lea.hbm %s1051_s4, 16 }
  0x20   : > { %386 = vmatpush.bf16.msra.mxu1 %v718_v7  ;;  %v258_v20 = vpack.c.b16 %v256_v15, %v256_v15  ;;  %v265_v28 = vrot.slane %v263_v21, 1  ;;  %v729_v36 = vld [vmem:[#allocation2 + $0x80] sm:$0xff]  ;;  %p862_p0 = scmp.ne.s32.totalorder %s860_s9, %s861_s10  ;;  %p867_p4 = scmp.lt.s32.totalorder %s865_s13, %s861_s10 }
  0x21   : > { %474 = vmatpush.bf16.msra.mxu2 %v734_v8  ;;  %v420_v37 = vrot.slane %v749_v31, 1  ;;  %v805_v44 = vld [vmem:[%s1049_s2] ss:$0 sm:$0xff] }
  0x22   : > { %v268_v29 = vshll.u32 %v258_v20, 16  ;;  %v266_v34 = vor.u32 %v265_v28, %v261_v27  ;;  %v421_v38 = vrot.slane %v258_v20, 1  ;;  %v806_v47 = vld [vmem:[%s1050_s3] ss:$0 sm:$0xff]  ;;  %p863_p1 = pnand %p862_p0, %p981_p5  ;;  %p868_p7 = por %p867_p4, %p866_p3 }
  0x23   : > { %324 = vmatpush.bf16.msra.mxu0 %v725_v9 }
  0x24   : > { %387 = vmatpush.bf16.msra.mxu1 %v717_v10  ;;  %v270_v35 = vrot.slane %v268_v29, 1  ;;  %v422_v40 = vsel %vm419_vm1, %v420_v37, %v421_v38  ;;  %p864_p2 = pneg %p863_p1 }
  0x25   : > { %475 = vmatpush.bf16.msra.mxu2 %v733_v11 }
  0x26   : > { %v271_v39 = vsel %vm259_vm0, %v266_v34, %v270_v35  ;;  %p869_p8 = pnand %p868_p7, %p864_p2 }
  0x27   : > { %325 = vmatpush.bf16.msra.mxu0 %v724_v13 }
  0x28   : > { %388 = vmatpush.bf16.msra.mxu1 %v716_v14 }
  0x29   : > { %476 = vmatpush.bf16.msra.mxu2 %v732_v16 }
  0x2b   : > { %326 = vmatpush.bf16.msra.mxu0 %v723_v18 }
  0x2c   : > { %389 = vmatpush.bf16.msra.mxu1 %v715_v19 }
  0x2d   : > { %477 = vmatpush.bf16.msra.mxu2 %v731_v22 }
  0x2f   : > { %327 = vmatpush.bf16.msra.mxu0 %v722_v25 }
  0x30   : > { %390 = vmatpush.bf16.msra.mxu1 %v714_v26 }
  0x31   : > { %478 = vmatpush.bf16.msra.mxu2 %v730_v30 }
  0x33   : > { %328 = vmatpush.bf16.msra.mxu0 %v721_v32 }
  0x34   : > { %391 = vmatpush.bf16.msra.mxu1 %v713_v33 }
  0x35   : > { %479 = vmatpush.bf16.msra.mxu2 %v729_v36 }
  0x36   : > { %329 = vmatmul.bf16.vlgmr.msra.gmra.mxu0 %v271_v39 }
  0x37   : > { %392 = vmatmul.bf16.vlgmr.msra.gmra.mxu1 %v739_v17 }
  0x38   : > { %480 = vmatmul.bf16.vlgmr.msra.gmra.mxu2 %v422_v40 }
  0xb3   : > { %v330_v41 = vpop.f32.mrf.mxu0 }
  0xb4   : > { %v393_v42 = vpop.f32.mrf.mxu1 }
  0xb5   : > { %v394_v43 = vadd.f32 %v393_v42, %v330_v41 }
  0xbb   : > { %v481_v45 = vpop.f32.mrf.mxu2  ;;  %v332_v49 = vpop.f32.mrf.mxu0 }
  0xbc   : > { %v486_v46 = vadd.f32 %v481_v45, %v394_v43  ;;  %v395_v50 = vpop.f32.mrf.mxu1 }
  0xbd   : > { %v396_v53 = vadd.f32 %v395_v50, %v332_v49 }
  0xbe   : > { %v491_v48 = vmul.f32 %v805_v44, %v486_v46 }
  0xc0   : > { %v496_v51 = vadd.f32 %v806_v47, %v491_v48 }
  0xc2   : > { %v498_v52 = vsub.f32 0.0, %v496_v51 }
  0xc3   : > { %v483_v54 = vpop.f32.mrf.mxu2 }
  0xc4   : > { %v500_v55 = vmul.f32 1.442695, %v498_v52  ;;  %v487_v56 = vadd.f32 %v483_v54, %v396_v53 }
  0xc6   : > { %v492_v57 = vmul.f32 %v805_v44, %v487_v56  ;;  %807 = vpow2.f32 %v500_v55 }
  0xc8   : > { %v497_v58 = vadd.f32 %v806_v47, %v492_v57 }
  0xca   : > { %v499_v59 = vsub.f32 0.0, %v497_v58 }
  0xcc   : > { %v502_v60 = vmul.f32 1.442695, %v499_v59  ;;  %v808_v61 = vpop.eup %807 }
  0xcd   : > { %v504_v62 = vadd.f32 1.0, %v808_v61 }
  0xce   : > { %809 = vpow2.f32 %v502_v60 }
  0xcf   : > { %811 = vrcp.f32 %v504_v62 }
  0xd4   : > { %v810_v63 = vpop.eup %809 }
  0xd5   : > { %v505_v0 = vadd.f32 1.0, %v810_v63  ;;  %v812_v1 = vpop.eup %811 }
  0xd6   : > { %v508_v3 = vmul.f32 %v812_v1, %v496_v51 }
  0xd7   : > { %813 = vrcp.f32 %v505_v0 }
  0xdd   : > { %v814_v2 = vpop.eup %813 }
  0xde   : > { %v509_v4 = vmul.f32 %v814_v2, %v497_v58 }
  0xe0   : > { %v745_v5 = vpack.c.bf16 %v509_v4, %v508_v3 }
  0xe2   : > { %746 = vst [vmem:[%s207_s6] sm:$0xff] %v745_v5  }
  0xe3   : > { %872 = shalt.err (!%p869_p8)
}
  0xe4   : > { %s916_s22 = smov 64   ;;  %s917_s23 = smov 4  }
  0xe5   : > { %755 = dma.vmem_to_hbm [thread:$0]  (%p981_p5), %s528_s7, 128, %s530_s8, %s515_s19, %s916_s22, %s916_s22, %s917_s23  }
  0xe6 PF: > { %p767_p9 = scmp.ge.s32.totalorder %s911_s18, 2  ;;  %s544_s27 = sand.u32 1, %s899_s15  }
  0xe7   : > { %s545_s28 = scalar_lea.sflag [#allocation4], %s544_s27 }
  0xe8   : > { %p762_p10 = pnand %p767_p9, %p985_p6 }
  0xea   : > { %p763_p11 = pneg %p762_p10 }
  0xec   : > { %894 = dma.done.wait (%p763_p11), %s545_s28, 128  }
  0xed   : > { %896 = vsyncadd (%p763_p11), %s545_s28, 4294967168  ;;  %p15_p12 = scmp.ge.s32.totalorder %s968_s21, 4   ;;  %s1054_s15 = smov %s903_s16 }
  0xee   : > { %s1055_s16 = smov %s907_s17  ;;  %s1056_s17 = smov %s979_s24 }
  0xef   : > { %s1057_s18 = smov %s968_s21  ;;  %17 = sbr.rel (!%p15_p12) target bundleno = 4 (0x4), region = 78 }
  0xf4   :  { %551 = vsyncpa [#allocation3], 1 }
  0xf5   :  { %553 = vsyncpa [#allocation3 + $0x1], 1 }
  0xf6   :  { %554 = vsyncpa [#allocation4], 1 }
  0xf7   :  { %556 = vsyncpa [#allocation4 + $0x1], 1 }

</bundles_post_ra>
